<compile_context>
chip_gen: v7x
topology: tpu7x:2x2x1
jax: 0.10.0
libtpu: 0.0.40
codegen_flags: <defaults>
</compile_context>

<pallas_src>
import jax
import jax.numpy as jnp
from jax.experimental import pallas as pl
from jax.experimental.pallas import tpu as pltpu


def _lm_kernel(ids_ref, mask_ref, w_ref, b_ref, emb_hbm, v_ref, tok_buf, copy_sem):
    """One grid step == one batch element (grid axis is 'parallel')."""
    b = pl.program_id(0)
    S, H = tok_buf.shape

    # --- embedding gather: DMA one (1, H) row per token id from the HBM table ---
    copies = []
    for s in range(S):                      # S is small & static -> fully unrolled
        cp = pltpu.make_async_copy(
            emb_hbm.at[pl.ds(ids_ref[s, b], 1), :],
            tok_buf.at[pl.ds(s, 1), :],
            copy_sem.at[s])
        cp.start()
        copies.append(cp)
    for cp in copies:
        cp.wait()

    # --- synthetic frozen encoder: dense + tanh (bf16 MXU operands, f32 accum) ---
    tok = tok_buf[...].astype(jnp.bfloat16)                            # (S, H)
    hid = jnp.tanh(
        jnp.dot(tok, w_ref[...], preferred_element_type=jnp.float32)
        + b_ref[...])                                                  # (S, H) f32

    # --- mean_pooling for this batch row:
    #     sum_s mask[s]*hid[s,:] / clamp(sum_s mask[s], 1e-9)  ---
    mask = mask_ref[...]                                               # (1, S) f32
    summed = jnp.dot(mask, hid, preferred_element_type=jnp.float32)    # (1, H)
    denom = jnp.maximum(jnp.sum(mask, axis=1, keepdims=True), 1e-9)    # (1, 1)
    v_ref[...] = summed / denom                                        # (1, H) lane-dense


def language_model_forward(onehot, attention_mask_bs, emb, w_bf16, bias):
    """onehot: (S, B, V) f32 one-hot; attention_mask_bs: (B, S) torch layout.

    Returns (v, ids): v is (B, 1, H) == mean_pooling(...).unsqueeze(1),
    ids is (S, B) int32 == inp.argmax(-1).
    """
    S, B, V = onehot.shape
    H = emb.shape[1]

    # t = inp.argmax(axis=-1): exact argmax, computed once in the wrapper.
    ids = jnp.argmax(onehot, axis=-1).astype(jnp.int32)                # (S, B)
    # Torch-layout mask kept as-is; reshape only (no transpose, no HBM round-trip).
    mask3 = attention_mask_bs.astype(jnp.float32).reshape(B, 1, S)     # (B, 1, S)

    cost = pl.CostEstimate(
        flops=2 * B * S * H * H + 2 * B * S * H,
        transcendentals=B * S * H,
        bytes_accessed=(ids.size * 4 + mask3.size * 4 + w_bf16.size * 2
                        + bias.size * 4 + B * S * H * 4 + B * H * 4),
    )

    v = pl.pallas_call(
        _lm_kernel,
        out_shape=jax.ShapeDtypeStruct((B, 1, H), jnp.float32),
        grid_spec=pltpu.PrefetchScalarGridSpec(
            num_scalar_prefetch=1,            # ids -> SMEM
            grid=(B,),
            in_specs=[
                pl.BlockSpec((None, 1, S), lambda b, ids_r: (b, 0, 0)),  # mask row
                pl.BlockSpec((H, H), lambda b, ids_r: (0, 0)),           # W (bf16)
                pl.BlockSpec((1, H), lambda b, ids_r: (0, 0)),           # bias (f32)
                pl.BlockSpec(memory_space=pl.ANY),                       # emb in HBM
            ],
            out_specs=pl.BlockSpec((None, 1, H), lambda b, ids_r: (b, 0, 0)),
            scratch_shapes=[
                pltpu.VMEM((S, H), jnp.float32),       # gathered token embeddings
                pltpu.SemaphoreType.DMA((S,)),         # one sem per gathered row
            ],
        ),
        compiler_params=pltpu.CompilerParams(dimension_semantics=("parallel",)),
        cost_estimate=cost,
    )(ids, mask3, w_bf16, bias, emb)
    return v, ids


if __name__ == "__main__":
    # Small shapes implied by the forward: seq=8, batch=2, vocab=128, hidden=128.
    S, B, V, H = 8, 2, 128, 128
    key = jax.random.PRNGKey(0)
    k1, k2, k3, k4 = jax.random.split(key, 4)

    tokens = jax.random.randint(k1, (S, B), 0, V)
    onehot = jax.nn.one_hot(tokens, V, dtype=jnp.float32)              # (S, B, V)
    attention_mask = jnp.ones((B, S), dtype=jnp.float32).at[1, 6:].set(0.0)

    # Deterministic synthetic "frozen encoder" parameters.
    emb = 0.02 * jax.random.normal(k2, (V, H), dtype=jnp.float32)
    W = 0.02 * jax.random.normal(k3, (H, H), dtype=jnp.float32)
    bias = 0.01 * jax.random.normal(k4, (1, H), dtype=jnp.float32)
    w_bf16 = W.astype(jnp.bfloat16)   # frozen weights stored bf16 (MXU-native on v6e/v7x)

    v, ids = language_model_forward(onehot, attention_mask, emb, w_bf16, bias)
    jax.block_until_ready((v, ids))

    # Pure-JAX f32 reference (same bf16-rounded W values; tok cast in kernel is lossy,
    # so tolerance is loosened per review guidance).
    tok_ref = emb[tokens]                                              # (S, B, H)
    hid_ref = jnp.tanh(tok_ref @ w_bf16.astype(jnp.float32) + bias)    # (S, B, H)
    m_sb = attention_mask.T                                            # (S, B)
    num = jnp.sum(hid_ref * m_sb[:, :, None], axis=0)                  # (B, H)
    den = jnp.maximum(jnp.sum(m_sb, axis=0), 1e-9)[:, None]            # (B, 1)
    v_ref = (num / den)[:, None, :]                                    # (B, 1, H)

    assert v.shape == (B, 1, H)
    assert jnp.allclose(v, v_ref, atol=1e-2, rtol=1e-2)
    assert jnp.array_equal(ids, tokens)
    print("KERNEL_OK")
</pallas_src>

<mosaic_0001>
module attributes {stable_mosaic.version = 11 : i64} {
  func.func @_lm_kernel(%arg0: i32, %arg1: memref<8x2xi32, #tpu.memory_space<smem>>, %arg2: memref<1x1x8xf32, #tpu.memory_space<vmem>>, %arg3: memref<128x128xbf16, #tpu.memory_space<vmem>>, %arg4: memref<1x128xf32, #tpu.memory_space<vmem>>, %arg5: memref<128x128xf32, #tpu.memory_space<any>>, %arg6: memref<1x1x128xf32, #tpu.memory_space<vmem>>, %arg7: memref<8x128xf32, #tpu.memory_space<vmem>>, %arg8: memref<8x!tpu.dma_semaphore, #tpu.memory_space<semaphore_mem>>) attributes {dimension_semantics = [#tpu.dimension_semantics<parallel>], iteration_bounds = array<i64: 2>, scalar_prefetch = 1 : i64, scratch_operands = 2 : i64, tpu.core_type = #tpu.core_type<tc>, window_params = [{transform_indices = @transform_0, window_bounds = array<i64: 1, 1, 8>}, {pipeline_mode = #tpu.pipeline_mode<synchronous>, transform_indices = @transform_1, window_bounds = array<i64: 128, 128>}, {pipeline_mode = #tpu.pipeline_mode<synchronous>, transform_indices = @transform_2, window_bounds = array<i64: 1, 128>}, {}, {transform_indices = @transform_4, window_bounds = array<i64: 1, 1, 128>}]} {
    %c0 = arith.constant 0 : index
    %0 = arith.index_cast %arg0 : i32 to index
    %1 = memref.load %arg1[%c0, %0] : memref<8x2xi32, #tpu.memory_space<smem>>
    %c0_i32 = arith.constant 0 : i32
    %c0_i32_0 = arith.constant 0 : i32
    %2 = tpu.memref_slice %arg5[%1, %c0_i32_0] : memref<128x128xf32, #tpu.memory_space<any>> -> memref<1x128xf32, #tpu.memory_space<any>>
    %c0_i32_1 = arith.constant 0 : i32
    %c0_i32_2 = arith.constant 0 : i32
    %3 = tpu.memref_slice %arg7[%c0_i32_1, %c0_i32_2] : memref<8x128xf32, #tpu.memory_space<vmem>> -> memref<1x128xf32, #tpu.memory_space<vmem>>
    %4 = tpu.memref_slice %arg8[%c0_i32] : memref<8x!tpu.dma_semaphore, #tpu.memory_space<semaphore_mem>> -> memref<1x!tpu.dma_semaphore, #tpu.memory_space<semaphore_mem>>
    %5 = tpu.memref_squeeze %4 : memref<1x!tpu.dma_semaphore, #tpu.memory_space<semaphore_mem>> -> memref<!tpu.dma_semaphore, #tpu.memory_space<semaphore_mem>>
    tpu.enqueue_dma source(%2 : memref<1x128xf32, #tpu.memory_space<any>>) target(%3 : memref<1x128xf32, #tpu.memory_space<vmem>>) target_semaphore(%5 : memref<!tpu.dma_semaphore, #tpu.memory_space<semaphore_mem>>)
    %c1 = arith.constant 1 : index
    %6 = arith.index_cast %arg0 : i32 to index
    %7 = memref.load %arg1[%c1, %6] : memref<8x2xi32, #tpu.memory_space<smem>>
    %c1_i32 = arith.constant 1 : i32
    %c0_i32_3 = arith.constant 0 : i32
    %8 = tpu.memref_slice %arg5[%7, %c0_i32_3] : memref<128x128xf32, #tpu.memory_space<any>> -> memref<1x128xf32, #tpu.memory_space<any>>
    %c1_i32_4 = arith.constant 1 : i32
    %c0_i32_5 = arith.constant 0 : i32
    %9 = tpu.memref_slice %arg7[%c1_i32_4, %c0_i32_5] : memref<8x128xf32, #tpu.memory_space<vmem>> -> memref<1x128xf32, #tpu.memory_space<vmem>>
    %10 = tpu.memref_slice %arg8[%c1_i32] : memref<8x!tpu.dma_semaphore, #tpu.memory_space<semaphore_mem>> -> memref<1x!tpu.dma_semaphore, #tpu.memory_space<semaphore_mem>>
    %11 = tpu.memref_squeeze %10 : memref<1x!tpu.dma_semaphore, #tpu.memory_space<semaphore_mem>> -> memref<!tpu.dma_semaphore, #tpu.memory_space<semaphore_mem>>
    tpu.enqueue_dma source(%8 : memref<1x128xf32, #tpu.memory_space<any>>) target(%9 : memref<1x128xf32, #tpu.memory_space<vmem>>) target_semaphore(%11 : memref<!tpu.dma_semaphore, #tpu.memory_space<semaphore_mem>>)
    %c2 = arith.constant 2 : index
    %12 = arith.index_cast %arg0 : i32 to index
    %13 = memref.load %arg1[%c2, %12] : memref<8x2xi32, #tpu.memory_space<smem>>
    %c2_i32 = arith.constant 2 : i32
    %c0_i32_6 = arith.constant 0 : i32
    %14 = tpu.memref_slice %arg5[%13, %c0_i32_6] : memref<128x128xf32, #tpu.memory_space<any>> -> memref<1x128xf32, #tpu.memory_space<any>>
    %c2_i32_7 = arith.constant 2 : i32
    %c0_i32_8 = arith.constant 0 : i32
    %15 = tpu.memref_slice %arg7[%c2_i32_7, %c0_i32_8] : memref<8x128xf32, #tpu.memory_space<vmem>> -> memref<1x128xf32, #tpu.memory_space<vmem>>
    %16 = tpu.memref_slice %arg8[%c2_i32] : memref<8x!tpu.dma_semaphore, #tpu.memory_space<semaphore_mem>> -> memref<1x!tpu.dma_semaphore, #tpu.memory_space<semaphore_mem>>
    %17 = tpu.memref_squeeze %16 : memref<1x!tpu.dma_semaphore, #tpu.memory_space<semaphore_mem>> -> memref<!tpu.dma_semaphore, #tpu.memory_space<semaphore_mem>>
    tpu.enqueue_dma source(%14 : memref<1x128xf32, #tpu.memory_space<any>>) target(%15 : memref<1x128xf32, #tpu.memory_space<vmem>>) target_semaphore(%17 : memref<!tpu.dma_semaphore, #tpu.memory_space<semaphore_mem>>)
    %c3 = arith.constant 3 : index
    %18 = arith.index_cast %arg0 : i32 to index
    %19 = memref.load %arg1[%c3, %18] : memref<8x2xi32, #tpu.memory_space<smem>>
    %c3_i32 = arith.constant 3 : i32
    %c0_i32_9 = arith.constant 0 : i32
    %20 = tpu.memref_slice %arg5[%19, %c0_i32_9] : memref<128x128xf32, #tpu.memory_space<any>> -> memref<1x128xf32, #tpu.memory_space<any>>
    %c3_i32_10 = arith.constant 3 : i32
    %c0_i32_11 = arith.constant 0 : i32
    %21 = tpu.memref_slice %arg7[%c3_i32_10, %c0_i32_11] : memref<8x128xf32, #tpu.memory_space<vmem>> -> memref<1x128xf32, #tpu.memory_space<vmem>>
    %22 = tpu.memref_slice %arg8[%c3_i32] : memref<8x!tpu.dma_semaphore, #tpu.memory_space<semaphore_mem>> -> memref<1x!tpu.dma_semaphore, #tpu.memory_space<semaphore_mem>>
    %23 = tpu.memref_squeeze %22 : memref<1x!tpu.dma_semaphore, #tpu.memory_space<semaphore_mem>> -> memref<!tpu.dma_semaphore, #tpu.memory_space<semaphore_mem>>
    tpu.enqueue_dma source(%20 : memref<1x128xf32, #tpu.memory_space<any>>) target(%21 : memref<1x128xf32, #tpu.memory_space<vmem>>) target_semaphore(%23 : memref<!tpu.dma_semaphore, #tpu.memory_space<semaphore_mem>>)
    %c4 = arith.constant 4 : index
    %24 = arith.index_cast %arg0 : i32 to index
    %25 = memref.load %arg1[%c4, %24] : memref<8x2xi32, #tpu.memory_space<smem>>
    %c4_i32 = arith.constant 4 : i32
    %c0_i32_12 = arith.constant 0 : i32
    %26 = tpu.memref_slice %arg5[%25, %c0_i32_12] : memref<128x128xf32, #tpu.memory_space<any>> -> memref<1x128xf32, #tpu.memory_space<any>>
    %c4_i32_13 = arith.constant 4 : i32
    %c0_i32_14 = arith.constant 0 : i32
    %27 = tpu.memref_slice %arg7[%c4_i32_13, %c0_i32_14] : memref<8x128xf32, #tpu.memory_space<vmem>> -> memref<1x128xf32, #tpu.memory_space<vmem>>
    %28 = tpu.memref_slice %arg8[%c4_i32] : memref<8x!tpu.dma_semaphore, #tpu.memory_space<semaphore_mem>> -> memref<1x!tpu.dma_semaphore, #tpu.memory_space<semaphore_mem>>
    %29 = tpu.memref_squeeze %28 : memref<1x!tpu.dma_semaphore, #tpu.memory_space<semaphore_mem>> -> memref<!tpu.dma_semaphore, #tpu.memory_space<semaphore_mem>>
    tpu.enqueue_dma source(%26 : memref<1x128xf32, #tpu.memory_space<any>>) target(%27 : memref<1x128xf32, #tpu.memory_space<vmem>>) target_semaphore(%29 : memref<!tpu.dma_semaphore, #tpu.memory_space<semaphore_mem>>)
    %c5 = arith.constant 5 : index
    %30 = arith.index_cast %arg0 : i32 to index
    %31 = memref.load %arg1[%c5, %30] : memref<8x2xi32, #tpu.memory_space<smem>>
    %c5_i32 = arith.constant 5 : i32
    %c0_i32_15 = arith.constant 0 : i32
    %32 = tpu.memref_slice %arg5[%31, %c0_i32_15] : memref<128x128xf32, #tpu.memory_space<any>> -> memref<1x128xf32, #tpu.memory_space<any>>
    %c5_i32_16 = arith.constant 5 : i32
    %c0_i32_17 = arith.constant 0 : i32
    %33 = tpu.memref_slice %arg7[%c5_i32_16, %c0_i32_17] : memref<8x128xf32, #tpu.memory_space<vmem>> -> memref<1x128xf32, #tpu.memory_space<vmem>>
    %34 = tpu.memref_slice %arg8[%c5_i32] : memref<8x!tpu.dma_semaphore, #tpu.memory_space<semaphore_mem>> -> memref<1x!tpu.dma_semaphore, #tpu.memory_space<semaphore_mem>>
    %35 = tpu.memref_squeeze %34 : memref<1x!tpu.dma_semaphore, #tpu.memory_space<semaphore_mem>> -> memref<!tpu.dma_semaphore, #tpu.memory_space<semaphore_mem>>
    tpu.enqueue_dma source(%32 : memref<1x128xf32, #tpu.memory_space<any>>) target(%33 : memref<1x128xf32, #tpu.memory_space<vmem>>) target_semaphore(%35 : memref<!tpu.dma_semaphore, #tpu.memory_space<semaphore_mem>>)
    %c6 = arith.constant 6 : index
    %36 = arith.index_cast %arg0 : i32 to index
    %37 = memref.load %arg1[%c6, %36] : memref<8x2xi32, #tpu.memory_space<smem>>
    %c6_i32 = arith.constant 6 : i32
    %c0_i32_18 = arith.constant 0 : i32
    %38 = tpu.memref_slice %arg5[%37, %c0_i32_18] : memref<128x128xf32, #tpu.memory_space<any>> -> memref<1x128xf32, #tpu.memory_space<any>>
    %c6_i32_19 = arith.constant 6 : i32
    %c0_i32_20 = arith.constant 0 : i32
    %39 = tpu.memref_slice %arg7[%c6_i32_19, %c0_i32_20] : memref<8x128xf32, #tpu.memory_space<vmem>> -> memref<1x128xf32, #tpu.memory_space<vmem>>
    %40 = tpu.memref_slice %arg8[%c6_i32] : memref<8x!tpu.dma_semaphore, #tpu.memory_space<semaphore_mem>> -> memref<1x!tpu.dma_semaphore, #tpu.memory_space<semaphore_mem>>
    %41 = tpu.memref_squeeze %40 : memref<1x!tpu.dma_semaphore, #tpu.memory_space<semaphore_mem>> -> memref<!tpu.dma_semaphore, #tpu.memory_space<semaphore_mem>>
    tpu.enqueue_dma source(%38 : memref<1x128xf32, #tpu.memory_space<any>>) target(%39 : memref<1x128xf32, #tpu.memory_space<vmem>>) target_semaphore(%41 : memref<!tpu.dma_semaphore, #tpu.memory_space<semaphore_mem>>)
    %c7 = arith.constant 7 : index
    %42 = arith.index_cast %arg0 : i32 to index
    %43 = memref.load %arg1[%c7, %42] : memref<8x2xi32, #tpu.memory_space<smem>>
    %c7_i32 = arith.constant 7 : i32
    %c0_i32_21 = arith.constant 0 : i32
    %44 = tpu.memref_slice %arg5[%43, %c0_i32_21] : memref<128x128xf32, #tpu.memory_space<any>> -> memref<1x128xf32, #tpu.memory_space<any>>
    %c7_i32_22 = arith.constant 7 : i32
    %c0_i32_23 = arith.constant 0 : i32
    %45 = tpu.memref_slice %arg7[%c7_i32_22, %c0_i32_23] : memref<8x128xf32, #tpu.memory_space<vmem>> -> memref<1x128xf32, #tpu.memory_space<vmem>>
    %46 = tpu.memref_slice %arg8[%c7_i32] : memref<8x!tpu.dma_semaphore, #tpu.memory_space<semaphore_mem>> -> memref<1x!tpu.dma_semaphore, #tpu.memory_space<semaphore_mem>>
    %47 = tpu.memref_squeeze %46 : memref<1x!tpu.dma_semaphore, #tpu.memory_space<semaphore_mem>> -> memref<!tpu.dma_semaphore, #tpu.memory_space<semaphore_mem>>
    tpu.enqueue_dma source(%44 : memref<1x128xf32, #tpu.memory_space<any>>) target(%45 : memref<1x128xf32, #tpu.memory_space<vmem>>) target_semaphore(%47 : memref<!tpu.dma_semaphore, #tpu.memory_space<semaphore_mem>>)
    %c0_i32_24 = arith.constant 0 : i32
    %c0_i32_25 = arith.constant 0 : i32
    %48 = tpu.memref_slice %arg5[%1, %c0_i32_25] : memref<128x128xf32, #tpu.memory_space<any>> -> memref<1x128xf32, #tpu.memory_space<any>>
    %c0_i32_26 = arith.constant 0 : i32
    %c0_i32_27 = arith.constant 0 : i32
    %49 = tpu.memref_slice %arg7[%c0_i32_26, %c0_i32_27] : memref<8x128xf32, #tpu.memory_space<vmem>> -> memref<1x128xf32, #tpu.memory_space<vmem>>
    %50 = tpu.memref_slice %arg8[%c0_i32_24] : memref<8x!tpu.dma_semaphore, #tpu.memory_space<semaphore_mem>> -> memref<1x!tpu.dma_semaphore, #tpu.memory_space<semaphore_mem>>
    %51 = tpu.memref_squeeze %50 : memref<1x!tpu.dma_semaphore, #tpu.memory_space<semaphore_mem>> -> memref<!tpu.dma_semaphore, #tpu.memory_space<semaphore_mem>>
    tpu.wait_dma2 semaphore(%51 : memref<!tpu.dma_semaphore, #tpu.memory_space<semaphore_mem>>) src(%48 : memref<1x128xf32, #tpu.memory_space<any>>) dst(%49 : memref<1x128xf32, #tpu.memory_space<vmem>>)
    %c1_i32_28 = arith.constant 1 : i32
    %c0_i32_29 = arith.constant 0 : i32
    %52 = tpu.memref_slice %arg5[%7, %c0_i32_29] : memref<128x128xf32, #tpu.memory_space<any>> -> memref<1x128xf32, #tpu.memory_space<any>>
    %c1_i32_30 = arith.constant 1 : i32
    %c0_i32_31 = arith.constant 0 : i32
    %53 = tpu.memref_slice %arg7[%c1_i32_30, %c0_i32_31] : memref<8x128xf32, #tpu.memory_space<vmem>> -> memref<1x128xf32, #tpu.memory_space<vmem>>
    %54 = tpu.memref_slice %arg8[%c1_i32_28] : memref<8x!tpu.dma_semaphore, #tpu.memory_space<semaphore_mem>> -> memref<1x!tpu.dma_semaphore, #tpu.memory_space<semaphore_mem>>
    %55 = tpu.memref_squeeze %54 : memref<1x!tpu.dma_semaphore, #tpu.memory_space<semaphore_mem>> -> memref<!tpu.dma_semaphore, #tpu.memory_space<semaphore_mem>>
    tpu.wait_dma2 semaphore(%55 : memref<!tpu.dma_semaphore, #tpu.memory_space<semaphore_mem>>) src(%52 : memref<1x128xf32, #tpu.memory_space<any>>) dst(%53 : memref<1x128xf32, #tpu.memory_space<vmem>>)
    %c2_i32_32 = arith.constant 2 : i32
    %c0_i32_33 = arith.constant 0 : i32
    %56 = tpu.memref_slice %arg5[%13, %c0_i32_33] : memref<128x128xf32, #tpu.memory_space<any>> -> memref<1x128xf32, #tpu.memory_space<any>>
    %c2_i32_34 = arith.constant 2 : i32
    %c0_i32_35 = arith.constant 0 : i32
    %57 = tpu.memref_slice %arg7[%c2_i32_34, %c0_i32_35] : memref<8x128xf32, #tpu.memory_space<vmem>> -> memref<1x128xf32, #tpu.memory_space<vmem>>
    %58 = tpu.memref_slice %arg8[%c2_i32_32] : memref<8x!tpu.dma_semaphore, #tpu.memory_space<semaphore_mem>> -> memref<1x!tpu.dma_semaphore, #tpu.memory_space<semaphore_mem>>
    %59 = tpu.memref_squeeze %58 : memref<1x!tpu.dma_semaphore, #tpu.memory_space<semaphore_mem>> -> memref<!tpu.dma_semaphore, #tpu.memory_space<semaphore_mem>>
    tpu.wait_dma2 semaphore(%59 : memref<!tpu.dma_semaphore, #tpu.memory_space<semaphore_mem>>) src(%56 : memref<1x128xf32, #tpu.memory_space<any>>) dst(%57 : memref<1x128xf32, #tpu.memory_space<vmem>>)
    %c3_i32_36 = arith.constant 3 : i32
    %c0_i32_37 = arith.constant 0 : i32
    %60 = tpu.memref_slice %arg5[%19, %c0_i32_37] : memref<128x128xf32, #tpu.memory_space<any>> -> memref<1x128xf32, #tpu.memory_space<any>>
    %c3_i32_38 = arith.constant 3 : i32
    %c0_i32_39 = arith.constant 0 : i32
    %61 = tpu.memref_slice %arg7[%c3_i32_38, %c0_i32_39] : memref<8x128xf32, #tpu.memory_space<vmem>> -> memref<1x128xf32, #tpu.memory_space<vmem>>
    %62 = tpu.memref_slice %arg8[%c3_i32_36] : memref<8x!tpu.dma_semaphore, #tpu.memory_space<semaphore_mem>> -> memref<1x!tpu.dma_semaphore, #tpu.memory_space<semaphore_mem>>
    %63 = tpu.memref_squeeze %62 : memref<1x!tpu.dma_semaphore, #tpu.memory_space<semaphore_mem>> -> memref<!tpu.dma_semaphore, #tpu.memory_space<semaphore_mem>>
    tpu.wait_dma2 semaphore(%63 : memref<!tpu.dma_semaphore, #tpu.memory_space<semaphore_mem>>) src(%60 : memref<1x128xf32, #tpu.memory_space<any>>) dst(%61 : memref<1x128xf32, #tpu.memory_space<vmem>>)
    %c4_i32_40 = arith.constant 4 : i32
    %c0_i32_41 = arith.constant 0 : i32
    %64 = tpu.memref_slice %arg5[%25, %c0_i32_41] : memref<128x128xf32, #tpu.memory_space<any>> -> memref<1x128xf32, #tpu.memory_space<any>>
    %c4_i32_42 = arith.constant 4 : i32
    %c0_i32_43 = arith.constant 0 : i32
    %65 = tpu.memref_slice %arg7[%c4_i32_42, %c0_i32_43] : memref<8x128xf32, #tpu.memory_space<vmem>> -> memref<1x128xf32, #tpu.memory_space<vmem>>
    %66 = tpu.memref_slice %arg8[%c4_i32_40] : memref<8x!tpu.dma_semaphore, #tpu.memory_space<semaphore_mem>> -> memref<1x!tpu.dma_semaphore, #tpu.memory_space<semaphore_mem>>
    %67 = tpu.memref_squeeze %66 : memref<1x!tpu.dma_semaphore, #tpu.memory_space<semaphore_mem>> -> memref<!tpu.dma_semaphore, #tpu.memory_space<semaphore_mem>>
    tpu.wait_dma2 semaphore(%67 : memref<!tpu.dma_semaphore, #tpu.memory_space<semaphore_mem>>) src(%64 : memref<1x128xf32, #tpu.memory_space<any>>) dst(%65 : memref<1x128xf32, #tpu.memory_space<vmem>>)
    %c5_i32_44 = arith.constant 5 : i32
    %c0_i32_45 = arith.constant 0 : i32
    %68 = tpu.memref_slice %arg5[%31, %c0_i32_45] : memref<128x128xf32, #tpu.memory_space<any>> -> memref<1x128xf32, #tpu.memory_space<any>>
    %c5_i32_46 = arith.constant 5 : i32
    %c0_i32_47 = arith.constant 0 : i32
    %69 = tpu.memref_slice %arg7[%c5_i32_46, %c0_i32_47] : memref<8x128xf32, #tpu.memory_space<vmem>> -> memref<1x128xf32, #tpu.memory_space<vmem>>
    %70 = tpu.memref_slice %arg8[%c5_i32_44] : memref<8x!tpu.dma_semaphore, #tpu.memory_space<semaphore_mem>> -> memref<1x!tpu.dma_semaphore, #tpu.memory_space<semaphore_mem>>
    %71 = tpu.memref_squeeze %70 : memref<1x!tpu.dma_semaphore, #tpu.memory_space<semaphore_mem>> -> memref<!tpu.dma_semaphore, #tpu.memory_space<semaphore_mem>>
    tpu.wait_dma2 semaphore(%71 : memref<!tpu.dma_semaphore, #tpu.memory_space<semaphore_mem>>) src(%68 : memref<1x128xf32, #tpu.memory_space<any>>) dst(%69 : memref<1x128xf32, #tpu.memory_space<vmem>>)
    %c6_i32_48 = arith.constant 6 : i32
    %c0_i32_49 = arith.constant 0 : i32
    %72 = tpu.memref_slice %arg5[%37, %c0_i32_49] : memref<128x128xf32, #tpu.memory_space<any>> -> memref<1x128xf32, #tpu.memory_space<any>>
    %c6_i32_50 = arith.constant 6 : i32
    %c0_i32_51 = arith.constant 0 : i32
    %73 = tpu.memref_slice %arg7[%c6_i32_50, %c0_i32_51] : memref<8x128xf32, #tpu.memory_space<vmem>> -> memref<1x128xf32, #tpu.memory_space<vmem>>
    %74 = tpu.memref_slice %arg8[%c6_i32_48] : memref<8x!tpu.dma_semaphore, #tpu.memory_space<semaphore_mem>> -> memref<1x!tpu.dma_semaphore, #tpu.memory_space<semaphore_mem>>
    %75 = tpu.memref_squeeze %74 : memref<1x!tpu.dma_semaphore, #tpu.memory_space<semaphore_mem>> -> memref<!tpu.dma_semaphore, #tpu.memory_space<semaphore_mem>>
    tpu.wait_dma2 semaphore(%75 : memref<!tpu.dma_semaphore, #tpu.memory_space<semaphore_mem>>) src(%72 : memref<1x128xf32, #tpu.memory_space<any>>) dst(%73 : memref<1x128xf32, #tpu.memory_space<vmem>>)
    %c7_i32_52 = arith.constant 7 : i32
    %c0_i32_53 = arith.constant 0 : i32
    %76 = tpu.memref_slice %arg5[%43, %c0_i32_53] : memref<128x128xf32, #tpu.memory_space<any>> -> memref<1x128xf32, #tpu.memory_space<any>>
    %c7_i32_54 = arith.constant 7 : i32
    %c0_i32_55 = arith.constant 0 : i32
    %77 = tpu.memref_slice %arg7[%c7_i32_54, %c0_i32_55] : memref<8x128xf32, #tpu.memory_space<vmem>> -> memref<1x128xf32, #tpu.memory_space<vmem>>
    %78 = tpu.memref_slice %arg8[%c7_i32_52] : memref<8x!tpu.dma_semaphore, #tpu.memory_space<semaphore_mem>> -> memref<1x!tpu.dma_semaphore, #tpu.memory_space<semaphore_mem>>
    %79 = tpu.memref_squeeze %78 : memref<1x!tpu.dma_semaphore, #tpu.memory_space<semaphore_mem>> -> memref<!tpu.dma_semaphore, #tpu.memory_space<semaphore_mem>>
    tpu.wait_dma2 semaphore(%79 : memref<!tpu.dma_semaphore, #tpu.memory_space<semaphore_mem>>) src(%76 : memref<1x128xf32, #tpu.memory_space<any>>) dst(%77 : memref<1x128xf32, #tpu.memory_space<vmem>>)
    %c0_56 = arith.constant 0 : index
    %c0_57 = arith.constant 0 : index
    %80 = vector.load %arg7[%c0_56, %c0_57] : memref<8x128xf32, #tpu.memory_space<vmem>>, vector<8x128xf32>
    %81 = arith.truncf %80 : vector<8x128xf32> to vector<8x128xbf16>
    %c0_58 = arith.constant 0 : index
    %c0_59 = arith.constant 0 : index
    %82 = vector.load %arg3[%c0_58, %c0_59] : memref<128x128xbf16, #tpu.memory_space<vmem>>, vector<128x128xbf16>
    %cst = arith.constant dense<0.000000e+00> : vector<8x128xf32>
    %83 = tpu.matmul %81, %82, %cst {dimension_numbers = #tpu.dot_dimension_numbers<[1], [0], [0], [1], [0, 0, 1, 1], [], []>} : vector<8x128xbf16>, vector<128x128xbf16>, vector<8x128xf32> -> vector<8x128xf32>
    %c0_60 = arith.constant 0 : index
    %c0_61 = arith.constant 0 : index
    %84 = vector.load %arg4[%c0_60, %c0_61] : memref<1x128xf32, #tpu.memory_space<vmem>>, vector<1x128xf32>
    %85 = vector.broadcast %84 : vector<1x128xf32> to vector<8x128xf32>
    %86 = arith.addf %83, %85 : vector<8x128xf32>
    %87 = math.tanh %86 : vector<8x128xf32>
    %c0_62 = arith.constant 0 : index
    %c0_63 = arith.constant 0 : index
    %c0_64 = arith.constant 0 : index
    %88 = vector.load %arg2[%c0_62, %c0_63, %c0_64] : memref<1x1x8xf32, #tpu.memory_space<vmem>>, vector<1x1x8xf32>
    %89 = vector.shape_cast %88 : vector<1x1x8xf32> to vector<1x8xf32>
    %cst_65 = arith.constant dense<0.000000e+00> : vector<1x128xf32>
    %90 = tpu.matmul %89, %87, %cst_65 {dimension_numbers = #tpu.dot_dimension_numbers<[1], [0], [0], [1], [0, 0, 1, 1], [], []>} : vector<1x8xf32>, vector<8x128xf32>, vector<1x128xf32> -> vector<1x128xf32>
    %cst_66 = arith.constant dense<0.000000e+00> : vector<1xf32>
    %91 = vector.multi_reduction <add>, %89, %cst_66 [1] : vector<1x8xf32> to vector<1xf32>
    %92 = vector.shape_cast %91 : vector<1xf32> to vector<1x1xf32>
    %cst_67 = arith.constant 9.99999971E-10 : f32
    %93 = vector.broadcast %cst_67 : f32 to vector<1x1xf32>
    %94 = arith.maximumf %92, %93 : vector<1x1xf32>
    %95 = vector.broadcast %94 : vector<1x1xf32> to vector<1x128xf32>
    %96 = arith.divf %90, %95 : vector<1x128xf32>
    %c0_68 = arith.constant 0 : index
    %c0_69 = arith.constant 0 : index
    %c0_70 = arith.constant 0 : index
    %97 = vector.load %arg6[%c0_68, %c0_69, %c0_70] : memref<1x1x128xf32, #tpu.memory_space<vmem>>, vector<1x1x128xf32>
    %98 = vector.shape_cast %97 : vector<1x1x128xf32> to vector<1x128xf32>
    %99 = vector.shape_cast %96 : vector<1x128xf32> to vector<1x1x128xf32>
    tpu.vector_store %arg6[%c0_68, %c0_69, %c0_70], %99 {strides = array<i32>} : memref<1x1x128xf32, #tpu.memory_space<vmem>>, vector<1x1x128xf32>,
    return
  }
  func.func @transform_0(%arg0: i32, %arg1: memref<8x2xi32, #tpu.memory_space<smem>>) -> (i32, i32, i32) {
    %c0_i32 = arith.constant 0 : i32
    %c0_i32_0 = arith.constant 0 : i32
    %c0_i32_1 = arith.constant 0 : i32
    return %arg0, %c0_i32, %c0_i32_0 : i32, i32, i32
  }
  func.func @transform_1(%arg0: i32, %arg1: memref<8x2xi32, #tpu.memory_space<smem>>) -> (i32, i32) {
    %c0_i32 = arith.constant 0 : i32
    %c0_i32_0 = arith.constant 0 : i32
    %c0_i32_1 = arith.constant 0 : i32
    return %c0_i32, %c0_i32_0 : i32, i32
  }
  func.func @transform_2(%arg0: i32, %arg1: memref<8x2xi32, #tpu.memory_space<smem>>) -> (i32, i32) {
    %c0_i32 = arith.constant 0 : i32
    %c0_i32_0 = arith.constant 0 : i32
    %c0_i32_1 = arith.constant 0 : i32
    return %c0_i32, %c0_i32_0 : i32, i32
  }
  func.func @transform_4(%arg0: i32, %arg1: memref<8x2xi32, #tpu.memory_space<smem>>) -> (i32, i32, i32) {
    %c0_i32 = arith.constant 0 : i32
    %c0_i32_0 = arith.constant 0 : i32
    %c0_i32_1 = arith.constant 0 : i32
    return %arg0, %c0_i32, %c0_i32_0 : i32, i32, i32
  }
}

</mosaic_0001>

<bundles_post_ra>
// kernel: tpu_custom_call.1
= control target key start
LH: loop header
LB: loop body
LE: loop exit
PB: predicated region body
PF: predicated region fallthrough
CT: control target
= control target key end

     0   :  { %s1511_s0 = inlined_call_operand.vmem [shape: s32[8,2], index: 0, kind: input, shape index: {}]   ;;  %s1512_s1 = inlined_call_operand.vmem [shape: f32[2,1,8], index: 1, kind: input, shape index: {}]   ;;  %s1513_s2 = inlined_call_operand.hbm [shape: bf16[128,128], index: 2, kind: input, shape index: {}]   ;;  %s1514_s3 = inlined_call_operand.vmem [shape: f32[1,128], index: 3, kind: input, shape index: {}]   ;;  %s1515_s4 = inlined_call_operand.hbm [shape: f32[128,128], index: 4, kind: input, shape index: {}]   ;;  %s1516_s5 = inlined_call_operand.hbm [shape: f32[2,1,128], index: 5, kind: output, shape index: {}]  }
   0x1   :  { %1525 = sst [smem:[#allocation44_spill]] %s1513_s2  ;;  %s10_s20 = sshll.u32 %s1511_s0, 4  ;;  %s11_s20 = int_to_ptr.vmem [resolvable:$true] %s10_s20 }
   0x2   :  { %s866_s21 = scalar_lea.vmem %s11_s20, 128  ;;  %p871_p1 = scmp.lt.s32.totalorder %s11_s20, %s11_s20 }
   0x3   :  { %p867_p0 = scmp.ne.s32.totalorder %s11_s20, %s866_s21  ;;  %p872_p2 = scmp.lt.s32.totalorder %s866_s21, %s866_s21 }
   0x5   :  { %p873_p3 = por %p872_p2, %p871_p1 }
   0x7   :  { %p874_p4 = pnand %p873_p3, %p867_p0 }
   0x9   :  { %877 = shalt.err (!%p874_p4)  }
   0xa   :  { %s1184_s22 = smov [#allocation5]  }
   0xb   :  { %13 = dma.vmem_to_smem %s11_s20, 128, %s1184_s22, [#allocation4] }
   0xc   :  { %1142 = dma.done.wait [#allocation4], 128 }
   0xd   :  { %1143 = vsyncadd [#allocation4], 4294967168 }
   0xe   :  { %15 = sfence }
   0xf   :  { %16 = vsyncpa [#allocation7], 0 }
  0x10   :  { %17 = vsyncpa [#allocation8], 0 }
  0x11   :  { %19 = vsyncpa [#allocation8 + $0x1], 0  ;;  %s1232_s23 = smov 0   ;;  %s1234_s24 = smov 0  }
  0x12   :  { %s1236_s0 = smov 0   ;;  %s1238_s25 = smov 0  }
  0x13 LB: > { %1526 = sst [smem:[#allocation39_spill]] %s1170_s23  ;;  %s1253_s26 = sadd.s32 4294967295, %s1182_s25   ;;  %s1182_s25 = sphi %s1238_s25, %s1546_s25   ;;  %s1178_s0 = sphi %s1236_s0, %s1548_s0   ;;  %s1174_s24 = sphi %s1234_s24, %s1550_s24   ;;  %s1170_s23 = sphi %s1232_s23, %s1549_s23  }
  0x14   : > { %1527 = sst [smem:[#allocation40_spill]] %s1178_s0  ;;  %s699_s27 = sadd.s32 4294967294, %s1182_s25  }
  0x15   : > { %s1257_s28 = sadd.s32 1, %s1182_s25   ;;  %s100_s29 = sadd.s32 1, %s1178_s0 }
  0x16   : > { %1528 = sst [smem:[#allocation41_spill]] %s1257_s28  ;;  %s97_s30 = ssub.s32 %s1182_s25, %s1257_s28 }
  0x17   : > { %p110_p5 = scmp.ne.s32.totalorder %s1178_s0, %s1174_s24  ;;  %p98_p6 = scmp.eq.s32.totalorder %s97_s30, 0 }
  0x18   : > { %p111_p7 = scmp.eq.s32.totalorder %s1253_s26, 1  ;;  %p116_p8 = scmp.ne.s32.totalorder %s1174_s24, %s1170_s23 }
  0x19   : > { %p117_p9 = scmp.eq.s32.totalorder %s699_s27, 1  ;;  %p700_p12 = scmp.ge.s32.totalorder %s1182_s25, 1 }
  0x1a   : > { %s1268_s6 = scalar_select %p98_p6, %s1178_s0, %s100_s29  }
  0x1b   : > { %p1270_p10 = por %p111_p7, %p110_p5  ;;  %p1274_p11 = por %p117_p9, %p116_p8 }
  0x1c   : > { %1529 = sst [smem:[#allocation42_spill]] %s1268_s6  ;;  %p124_p13 = scmp.lt.s32.totalorder %s1182_s25, 3 }
  0x1d   : > { %s1530_s7 = scalar_select %p1270_p10, 1, 0 }
  0x1e   : > { %s1531_s8 = scalar_select %p1274_p11, 1, 0 }
  0x1f   : > { %p1517_p0 = scmp.eq.s32.totalorder %s1253_s26, 0  ;;  %p1281_p1 = pnand %p700_p12, %p124_p13 }
  0x20   : > { %1532 = sst [smem:[#allocation43_spill]] %s1531_s8  ;;  %s1185_s10 = smov [#allocation6]  }
  0x21   : > { %s1533_s9 = scalar_select %p1281_p1, 1, 0 }
  0x22   : > { %s136_s11 = sshll.u32 %s1185_s10, 4  ;;  %p797_p2 = pneg %p1281_p1  ;;  %s137_s11 = int_to_ptr.vmem [resolvable:$true] %s136_s11 }
  0x23   : > { %s1535_s2 = sld [smem:[#allocation44_spill]] }
  0x24   : > { %p1289_p3 = pnand %p1517_p0, %p797_p2 }
  0x26   : > { %p880_p5 = pneg %p1289_p3 }
  0x29   : > { %s878_s15 = scalar_lea.hbm %s1535_s2, 1024 }
  0x2a   : > { %p879_p4 = scmp.ne.s32.totalorder %s1535_s2, %s878_s15  ;;  %p885_p8 = scmp.lt.u32.totalorder %s878_s15, %s1535_s2 }
  0x2c   : > { %p881_p6 = pnand %p880_p5, %p879_p4 }
  0x2e   : > { %p882_p7 = pneg %p881_p6 }
  0x30   : > { %p887_p9 = pnand %p885_p8, %p882_p7 }
  0x32   : > { %890 = shalt.err (!%p887_p9)
}
  0x33   : > { %s891_s20 = scalar_lea.vmem %s137_s11, 1024  ;;  %p899_p0 = scmp.lt.s32.totalorder %s137_s11, %s137_s11 }
  0x34   : > { %p892_p12 = scmp.ne.s32.totalorder %s137_s11, %s891_s20  ;;  %p900_p11 = scmp.lt.s32.totalorder %s891_s20, %s891_s20 }
  0x36   : > { %p894_p13 = pnand %p892_p12, %p880_p5  ;;  %p901_p10 = por %p900_p11, %p899_p0 }
  0x38   : > { %p895_p2 = pneg %p894_p13 }
  0x3a   : > { %p902_p1 = pnand %p901_p10, %p895_p2 }
  0x3c   : > { %905 = shalt.err (!%p902_p1)
}
  0x3d   : > { %s1186_s21 = smov 64   ;;  %s1187_s22 = smov 4  }
  0x3e   : > { %800 = dma.hbm_to_vmem [thread:$0]  (!%p1289_p3), %s1535_s2, 1024, %s137_s11, [#allocation7], %s1186_s21, %s1186_s21, %s1187_s22  }
  0x3f   : > { %p1536_p4 = scmp.ne.s32.totalorder %s1533_s9, 0 }
  0x40   : > { %p1537_p6 = scmp.eq.s32.totalorder (!%p1536_p4), %s1253_s26, 0 }
  0x41   : > { %161 = sbr.rel (%p1536_p4) target bundleno = 764 (0x2fc), region = 32 }
  0x48   : > { %1145 = dma.done.wait (%p1537_p6), [#allocation7], 1024   ;;  %p1538_p5 = pmov %p1537_p6 }
  0x49   : > { %p182_p10 = scmp.lt.s32.totalorder %s1253_s26, 1  ;;  %s186_s10 = sld [smem:[#allocation5 + %s1253_s26]] }
  0x4a   : > { %1147 = vsyncadd (%p1538_p5), [#allocation7], 4294966272  ;;  %s200_s9 = sshra.s32 %s1253_s26, 7  ;;  %s1188_s15 = smov [#allocation2]  }
  0x4b   : > { %s1319_s12 = scalar_select %p182_p10, %s1253_s26, 1 }
  0x4c   : > { %s196_s16 = sshll.u32 %s1188_s15, 4  ;;  %s1328_s17 = sshll.u32 %s200_s9, 7  ;;  %s1326_s16 = int_to_ptr.vmem [resolvable:$true] %s196_s16 }
  0x4d   : > { %s742_s18 = sadd.s32 128, %s1328_s17  ;;  %s1332_s19 = sand.u32 127, %s1253_s26 }
  0x4e   : > { %s206_s21 = sadd.s32 %s742_s18, %s1332_s19  ;;  %s1343_s9 = scalar_lea.hbm %s1515_s4, 2048 }
  0x4f   : > { %s705_s20 = sshll.u32 %s186_s10, 4  ;;  %s1338_s30 = sld [smem:[#allocation5 + %s206_s21]] }
  0x50   : > { %s188_s29 = scalar_lea.hbm %s1515_s4, %s705_s20 }
  0x51   : > { %s906_s11 = scalar_lea.hbm %s188_s29, 16  ;;  %p909_p0 = scmp.lt.u32.totalorder %s188_s29, %s1515_s4 }
  0x52   : > { %p907_p11 = scmp.ne.s32.totalorder %s188_s29, %s906_s11  ;;  %p910_p1 = scmp.lt.u32.totalorder %s1343_s9, %s906_s11 }
  0x53   : > { %p912_p7 = scmp.lt.u32.totalorder %s906_s11, %s188_s29 }
  0x54   : > { %p911_p3 = por %p910_p1, %p909_p0 }
  0x56   : > { %p913_p8 = por %p912_p7, %p911_p3 }
  0x58   : > { %p914_p9 = pnand %p913_p8, %p907_p11 }
  0x5a   : > { %917 = shalt.err (!%p914_p9)  }
  0x5b   : > { %s918_s10 = scalar_lea.vmem %s1326_s16, 16  ;;  %s1352_s18 = scalar_lea.vmem %s1326_s16, 128 }
  0x5c   : > { %p919_p12 = scmp.ne.s32.totalorder %s1326_s16, %s918_s10  ;;  %p923_p13 = scmp.lt.s32.totalorder %s1326_s16, %s1326_s16 }
  0x5d   : > { %p924_p2 = scmp.lt.s32.totalorder %s1352_s18, %s918_s10 }
  0x5f   : > { %p925_p4 = por %p924_p2, %p923_p13 }
  0x61   : > { %p926_p6 = pnand %p925_p4, %p919_p12 }
  0x63   : > { %929 = shalt.err (!%p926_p6)  }
  0x64   : > { %199 = dma.hbm_to_vmem [thread:$0]  %s188_s29, 16, %s1326_s16, [#allocation3] }
  0x65   : > { %s744_s2 = sadd.s32 256, %s1328_s17  ;;  %s1189_s14 = smov [#allocation2 + $0x1]  }
  0x66   : > { %s219_s20 = sshll.u32 %s1189_s14, 4  ;;  %s225_s21 = sadd.s32 %s744_s2, %s1332_s19  ;;  %s220_s20 = int_to_ptr.vmem [resolvable:$true] %s219_s20 }
  0x67   : > { %s226_s22 = sld [smem:[#allocation5 + %s225_s21]]  ;;  %s746_s27 = sadd.s32 384, %s1328_s17 }
  0x68   : > { %s707_s11 = sshll.u32 %s1338_s30, 4  ;;  %s1190_s13 = smov [#allocation2 + $0x2]  }
  0x69   : > { %s238_s15 = sshll.u32 %s1190_s13, 4  ;;  %s209_s0 = scalar_lea.hbm %s1515_s4, %s707_s11  ;;  %s1365_s15 = int_to_ptr.vmem [resolvable:$true] %s238_s15 }
  0x6a   : > { %s930_s28 = scalar_lea.hbm %s209_s0, 16  ;;  %p933_p10 = scmp.lt.u32.totalorder %s209_s0, %s1515_s4 }
  0x6b   : > { %p931_p5 = scmp.ne.s32.totalorder %s209_s0, %s930_s28  ;;  %p934_p11 = scmp.lt.u32.totalorder %s1343_s9, %s930_s28 }
  0x6c   : > { %p936_p1 = scmp.lt.u32.totalorder %s930_s28, %s209_s0 }
  0x6d   : > { %p935_p0 = por %p934_p11, %p933_p10 }
  0x6f   : > { %p937_p3 = por %p936_p1, %p935_p0 }
  0x71   : > { %p938_p7 = pnand %p937_p3, %p931_p5 }
  0x73   : > { %941 = shalt.err (!%p938_p7)  }
  0x74   : > { %s942_s30 = scalar_lea.vmem %s220_s20, 16  ;;  %p947_p9 = scmp.lt.s32.totalorder %s220_s20, %s1326_s16 }
  0x75   : > { %p943_p8 = scmp.ne.s32.totalorder %s220_s20, %s942_s30  ;;  %p948_p12 = scmp.lt.s32.totalorder %s1352_s18, %s942_s30 }
  0x77   : > { %p949_p13 = por %p948_p12, %p947_p9 }
  0x79   : > { %p950_p2 = pnand %p949_p13, %p943_p8 }
  0x7b   : > { %953 = shalt.err (!%p950_p2)  }
  0x7c   : > { %222 = dma.hbm_to_vmem [thread:$0]  %s209_s0, 16, %s220_s20, [#allocation3 + $0x1] }
  0x7d   : > { %s244_s6 = sadd.s32 %s746_s27, %s1332_s19  ;;  %s709_s8 = sshll.u32 %s226_s22, 4 }
  0x7e   : > { %s1374_s2 = sld [smem:[#allocation5 + %s244_s6]]  ;;  %s228_s21 = scalar_lea.hbm %s1515_s4, %s709_s8 }
  0x7f   : > { %s1191_s11 = smov [#allocation2 + $0x3]   ;;  %s954_s10 = scalar_lea.hbm %s228_s21, 16 }
  0x80   : > { %s257_s13 = sshll.u32 %s1191_s11, 4  ;;  %p955_p4 = scmp.ne.s32.totalorder %s228_s21, %s954_s10  ;;  %s258_s13 = int_to_ptr.vmem [resolvable:$true] %s257_s13 }
  0x81   : > { %p957_p6 = scmp.lt.u32.totalorder %s228_s21, %s1515_s4  ;;  %p958_p5 = scmp.lt.u32.totalorder %s1343_s9, %s954_s10 }
  0x82   : > { %p960_p11 = scmp.lt.u32.totalorder %s954_s10, %s228_s21 }
  0x83   : > { %p959_p10 = por %p958_p5, %p957_p6 }
  0x85   : > { %p961_p0 = por %p960_p11, %p959_p10 }
  0x87   : > { %p962_p1 = pnand %p961_p0, %p955_p4 }
  0x89   : > { %965 = shalt.err (!%p962_p1)  }
  0x8a   : > { %s966_s0 = scalar_lea.vmem %s1365_s15, 16  ;;  %p971_p7 = scmp.lt.s32.totalorder %s1365_s15, %s1326_s16 }
  0x8b   : > { %p967_p3 = scmp.ne.s32.totalorder %s1365_s15, %s966_s0  ;;  %p972_p8 = scmp.lt.s32.totalorder %s1352_s18, %s966_s0 }
  0x8d   : > { %p973_p9 = por %p972_p8, %p971_p7 }
  0x8f   : > { %p974_p12 = pnand %p973_p9, %p967_p3 }
  0x91   : > { %977 = shalt.err (!%p974_p12)  }
  0x92   : > { %241 = dma.hbm_to_vmem [thread:$0]  %s228_s21, 16, %s1365_s15, [#allocation3 + $0x2] }
  0x93   : > { %s748_s20 = sadd.s32 512, %s1328_s17  ;;  %s711_s6 = sshll.u32 %s1374_s2, 4 }
  0x94   : > { %s263_s22 = sadd.s32 %s748_s20, %s1332_s19  ;;  %s1192_s8 = smov [#allocation2 + $0x4]  }
  0x95   : > { %s1391_s27 = sld [smem:[#allocation5 + %s263_s22]]  ;;  %s276_s28 = sshll.u32 %s1192_s8, 4  ;;  %s277_s28 = int_to_ptr.vmem [resolvable:$true] %s276_s28 }
  0x96   : > { %s247_s10 = scalar_lea.hbm %s1515_s4, %s711_s6  ;;  %s750_s29 = sadd.s32 640, %s1328_s17 }
  0x97   : > { %s978_s30 = scalar_lea.hbm %s247_s10, 16  ;;  %p981_p2 = scmp.lt.u32.totalorder %s247_s10, %s1515_s4 }
  0x98   : > { %p979_p13 = scmp.ne.s32.totalorder %s247_s10, %s978_s30  ;;  %p982_p4 = scmp.lt.u32.totalorder %s1343_s9, %s978_s30 }
  0x99   : > { %p984_p5 = scmp.lt.u32.totalorder %s978_s30, %s247_s10 }
  0x9a   : > { %p983_p6 = por %p982_p4, %p981_p2 }
  0x9c   : > { %p985_p10 = por %p984_p5, %p983_p6 }
  0x9e   : > { %p986_p11 = pnand %p985_p10, %p979_p13 }
  0xa0   : > { %989 = shalt.err (!%p986_p11)  }
  0xa1   : > { %s990_s15 = scalar_lea.vmem %s258_s13, 16  ;;  %p995_p1 = scmp.lt.s32.totalorder %s258_s13, %s1326_s16 }
  0xa2   : > { %p991_p0 = scmp.ne.s32.totalorder %s258_s13, %s990_s15  ;;  %p996_p3 = scmp.lt.s32.totalorder %s1352_s18, %s990_s15 }
  0xa4   : > { %p997_p7 = por %p996_p3, %p995_p1 }
  0xa6   : > { %p998_p8 = pnand %p997_p7, %p991_p0 }
  0xa8   : > { %1001 = shalt.err (!%p998_p8)  }
  0xa9   : > { %260 = dma.hbm_to_vmem [thread:$0]  %s247_s10, 16, %s258_s13, [#allocation3 + $0x3] }
  0xaa   : > { %s282_s23 = sadd.s32 %s750_s29, %s1332_s19  ;;  %s713_s21 = sshll.u32 %s1391_s27, 4 }
  0xab   : > { %s1405_s2 = sld [smem:[#allocation5 + %s282_s23]]  ;;  %s1193_s20 = smov [#allocation2 + $0x5]  }
  0xac   : > { %s295_s22 = sshll.u32 %s1193_s20, 4  ;;  %s266_s14 = scalar_lea.hbm %s1515_s4, %s713_s21  ;;  %s296_s22 = int_to_ptr.vmem [resolvable:$true] %s295_s22 }
  0xad   : > { %s752_s11 = sadd.s32 768, %s1328_s17  ;;  %s1002_s30 = scalar_lea.hbm %s266_s14, 16 }
  0xae   : > { %p1003_p9 = scmp.ne.s32.totalorder %s266_s14, %s1002_s30  ;;  %p1005_p12 = scmp.lt.u32.totalorder %s266_s14, %s1515_s4 }
  0xaf   : > { %p1006_p13 = scmp.lt.u32.totalorder %s1343_s9, %s1002_s30  ;;  %p1008_p4 = scmp.lt.u32.totalorder %s1002_s30, %s266_s14 }
  0xb1   : > { %p1007_p2 = por %p1006_p13, %p1005_p12 }
  0xb3   : > { %p1009_p6 = por %p1008_p4, %p1007_p2 }
  0xb5   : > { %p1010_p5 = pnand %p1009_p6, %p1003_p9 }
  0xb7   : > { %1013 = shalt.err (!%p1010_p5)  }
  0xb8   : > { %s1014_s27 = scalar_lea.vmem %s277_s28, 16  ;;  %p1019_p11 = scmp.lt.s32.totalorder %s277_s28, %s1326_s16 }
  0xb9   : > { %p1015_p10 = scmp.ne.s32.totalorder %s277_s28, %s1014_s27  ;;  %p1020_p0 = scmp.lt.s32.totalorder %s1352_s18, %s1014_s27 }
  0xbb   : > { %p1021_p1 = por %p1020_p0, %p1019_p11 }
  0xbd   : > { %p1022_p3 = pnand %p1021_p1, %p1015_p10 }
  0xbf   : > { %1025 = shalt.err (!%p1022_p3)  }
  0xc0   : > { %279 = dma.hbm_to_vmem [thread:$0]  %s266_s14, 16, %s277_s28, [#allocation3 + $0x4] }
  0xc1   : > { %s301_s10 = sadd.s32 %s752_s11, %s1332_s19  ;;  %s715_s15 = sshll.u32 %s1405_s2, 4 }
  0xc2   : > { %s302_s29 = sld [smem:[#allocation5 + %s301_s10]]  ;;  %s1194_s23 = smov [#allocation2 + $0x6]  }
  0xc3   : > { %s314_s21 = sshll.u32 %s1194_s23, 4  ;;  %s285_s8 = scalar_lea.hbm %s1515_s4, %s715_s15  ;;  %s315_s21 = int_to_ptr.vmem [resolvable:$true] %s314_s21 }
  0xc4   : > { %s754_s30 = sadd.s32 896, %s1328_s17  ;;  %s1026_s0 = scalar_lea.hbm %s285_s8, 16 }
  0xc5   : > { %p1027_p7 = scmp.ne.s32.totalorder %s285_s8, %s1026_s0  ;;  %p1029_p8 = scmp.lt.u32.totalorder %s285_s8, %s1515_s4 }
  0xc6   : > { %p1030_p9 = scmp.lt.u32.totalorder %s1343_s9, %s1026_s0  ;;  %p1032_p13 = scmp.lt.u32.totalorder %s1026_s0, %s285_s8 }
  0xc8   : > { %p1031_p12 = por %p1030_p9, %p1029_p8 }
  0xca   : > { %p1033_p2 = por %p1032_p13, %p1031_p12 }
  0xcc   : > { %p1034_p4 = pnand %p1033_p2, %p1027_p7 }
  0xce   : > { %1037 = shalt.err (!%p1034_p4)  }
  0xcf   : > { %s1038_s28 = scalar_lea.vmem %s296_s22, 16  ;;  %p1043_p5 = scmp.lt.s32.totalorder %s296_s22, %s1326_s16 }
  0xd0   : > { %p1039_p6 = scmp.ne.s32.totalorder %s296_s22, %s1038_s28  ;;  %p1044_p10 = scmp.lt.s32.totalorder %s1352_s18, %s1038_s28 }
  0xd2   : > { %p1045_p11 = por %p1044_p10, %p1043_p5 }
  0xd4   : > { %p1046_p0 = pnand %p1045_p11, %p1039_p6 }
  0xd6   : > { %1049 = shalt.err (!%p1046_p0)  }
  0xd7   : > { %298 = dma.hbm_to_vmem [thread:$0]  %s285_s8, 16, %s296_s22, [#allocation3 + $0x5] }
  0xd8   : > { %s320_s17 = sadd.s32 %s754_s30, %s1332_s19  ;;  %s717_s14 = sshll.u32 %s302_s29, 4 }
  0xd9   : > { %s321_s2 = sld [smem:[#allocation5 + %s320_s17]]  ;;  %s304_s15 = scalar_lea.hbm %s1515_s4, %s717_s14 }
  0xda   : > { %s1195_s23 = smov [#allocation2 + $0x7]   ;;  %s1050_s6 = scalar_lea.hbm %s304_s15, 16 }
  0xdb   : > { %s333_s20 = sshll.u32 %s1195_s23, 4  ;;  %p1051_p1 = scmp.ne.s32.totalorder %s304_s15, %s1050_s6  ;;  %s334_s20 = int_to_ptr.vmem [resolvable:$true] %s333_s20 }
  0xdc   : > { %p1053_p3 = scmp.lt.u32.totalorder %s304_s15, %s1515_s4  ;;  %p1054_p7 = scmp.lt.u32.totalorder %s1343_s9, %s1050_s6 }
  0xdd   : > { %p1056_p9 = scmp.lt.u32.totalorder %s1050_s6, %s304_s15 }
  0xde   : > { %p1055_p8 = por %p1054_p7, %p1053_p3 }
  0xe0   : > { %p1057_p12 = por %p1056_p9, %p1055_p8 }
  0xe2   : > { %p1058_p13 = pnand %p1057_p12, %p1051_p1 }
  0xe4   : > { %1061 = shalt.err (!%p1058_p13)  }
  0xe5   : > { %s1062_s19 = scalar_lea.vmem %s315_s21, 16  ;;  %p1067_p4 = scmp.lt.s32.totalorder %s315_s21, %s1326_s16 }
  0xe6   : > { %p1063_p2 = scmp.ne.s32.totalorder %s315_s21, %s1062_s19  ;;  %p1068_p6 = scmp.lt.s32.totalorder %s1352_s18, %s1062_s19 }
  0xe8   : > { %p1069_p5 = por %p1068_p6, %p1067_p4 }
  0xea   : > { %p1070_p10 = pnand %p1069_p5, %p1063_p2 }
  0xec   : > { %1073 = shalt.err (!%p1070_p10)  }
  0xed   : > { %317 = dma.hbm_to_vmem [thread:$0]  %s304_s15, 16, %s315_s21, [#allocation3 + $0x6] }
  0xee   : > { %s719_s22 = sshll.u32 %s321_s2, 4 }
  0xef   : > { %s323_s30 = scalar_lea.hbm %s1515_s4, %s719_s22 }
  0xf0   : > { %s1074_s27 = scalar_lea.hbm %s323_s30, 16  ;;  %p1077_p0 = scmp.lt.u32.totalorder %s323_s30, %s1515_s4 }
  0xf1   : > { %p1075_p11 = scmp.ne.s32.totalorder %s323_s30, %s1074_s27  ;;  %p1078_p1 = scmp.lt.u32.totalorder %s1343_s9, %s1074_s27 }
  0xf2   : > { %p1080_p7 = scmp.lt.u32.totalorder %s1074_s27, %s323_s30 }
  0xf3   : > { %p1079_p3 = por %p1078_p1, %p1077_p0 }
  0xf5   : > { %p1081_p8 = por %p1080_p7, %p1079_p3 }
  0xf7   : > { %p1082_p9 = pnand %p1081_p8, %p1075_p11 }
  0xf9   : > { %1085 = shalt.err (!%p1082_p9)  }
  0xfa   : > { %s1086_s21 = scalar_lea.vmem %s334_s20, 16  ;;  %p1091_p13 = scmp.lt.s32.totalorder %s334_s20, %s1326_s16 }
  0xfb   : > { %p1087_p12 = scmp.ne.s32.totalorder %s334_s20, %s1086_s21  ;;  %p1092_p2 = scmp.lt.s32.totalorder %s1352_s18, %s1086_s21 }
  0xfd   : > { %p1093_p4 = por %p1092_p2, %p1091_p13 }
  0xff   : > { %p1094_p6 = pnand %p1093_p4, %p1087_p12 }
 0x101   : > { %1097 = shalt.err (!%p1094_p6)  }
 0x102   : > { %336 = dma.hbm_to_vmem [thread:$0]  %s323_s30, 16, %s334_s20, [#allocation3 + $0x7] }
 0x103   : > { %s1539_s2 = sand.u32 1, %s1174_s24  }
 0x104   : > { %s1451_s14 = scalar_lea.vmem [#allocation9], %s1539_s2 }
 0x105   : > { %1148 = dma.done.wait [#allocation3], 16 }
 0x106   : > { %1149 = vsyncadd [#allocation3], 4294967280 }
 0x107   : > { %1150 = dma.done.wait [#allocation3 + $0x1], 16 }
 0x108   : > { %1151 = vsyncadd [#allocation3 + $0x1], 4294967280 }
 0x109   : > { %1152 = dma.done.wait [#allocation3 + $0x2], 16 }
 0x10a   : > { %1153 = vsyncadd [#allocation3 + $0x2], 4294967280 }
 0x10b   : > { %1154 = dma.done.wait [#allocation3 + $0x3], 16 }
 0x10c   : > { %1155 = vsyncadd [#allocation3 + $0x3], 4294967280 }
 0x10d   : > { %1156 = dma.done.wait [#allocation3 + $0x4], 16 }
 0x10e   : > { %1157 = vsyncadd [#allocation3 + $0x4], 4294967280 }
 0x10f   : > { %1158 = dma.done.wait [#allocation3 + $0x5], 16 }
 0x110   : > { %1159 = vsyncadd [#allocation3 + $0x5], 4294967280 }
 0x111   : > { %1160 = dma.done.wait [#allocation3 + $0x6], 16 }
 0x112   : > { %1161 = vsyncadd [#allocation3 + $0x6], 4294967280 }
 0x113   : > { %1162 = dma.done.wait [#allocation3 + $0x7], 16 }
 0x114   : > { %1163 = vsyncadd [#allocation3 + $0x7], 4294967280  ;;  %v1196_v0 = vmov 0.0   ;;  %vm1197_vm0 = vmmov 0   ;;  %v854_v1 = vld [vmem:[#allocation6] sm:$0xff]   ;;  %v855_v2 = vld [vmem:[#allocation6 + $0x8] sm:$0xff]   ;;  %s1540_s18 = scalar_lea.vmem %s1512_s1, %s1319_s12  ;;  %s1541_s0 = smov %s1539_s2 }
 0x115   : > { %766 = vmatprep.subr.bf16.mxu0 %v1196_v0  ;;  %782 = vmatprep.mubr.msk.bf16.mxu0 %vm1197_vm0, %v1196_v0  ;;  %v856_v3 = vld [vmem:[#allocation6 + $0x10] sm:$0xff]   ;;  %v857_v4 = vld [vmem:[#allocation6 + $0x18] sm:$0xff]   ;;  %v858_v5 = vld [vmem:[#allocation6 + $0x20] sm:$0xff]   ;;  %vm543_vm1 = vcmask 57344   ;;  %vm469_vm2 = vcmask 64512   ;;  %s730_s12 = sshll.u32 %s1253_s26, 4 }
 0x116   : > { %786 = vmatprep.subr.mxu1 %v1196_v0  ;;  %788 = vmatprep.mubr.msk.f32.mxu1 %vm1197_vm0, %v1196_v0  ;;  %v859_v6 = vld [vmem:[#allocation6 + $0x28] sm:$0xff]   ;;  %v860_v7 = vld [vmem:[#allocation6 + $0x30] sm:$0xff]   ;;  %v861_v8 = vld [vmem:[#allocation6 + $0x38] sm:$0xff]   ;;  %s564_s15 = sshll.u32 %s1451_s14, 4  ;;  %s1466_s6 = scalar_lea.hbm %s1516_s5, %s730_s12  ;;  %s1468_s15 = int_to_ptr.vmem [resolvable:$true] %s564_s15 }
 0x117   : > { %767 = vmatpush3.bf16.msra.mxu0 %v854_v1  ;;  %v354_v9 = vld [vmem:[#allocation2] sm:$0xff]  ;;  %s552_s13 = scalar_lea.sflag [#allocation8], %s1541_s0  ;;  %s1098_s19 = scalar_lea.vmem %s1468_s15, 16 }
 0x118   : > { %768 = vmatprep.subr.bf16.mxu0 %v1196_v0  ;;  %v355_v10 = vpack.c.bf16 %v354_v9, %v354_v9  ;;  %v468_v11 = vld [vmem:[%s1540_s18] sm:$0x1]  ;;  %p1099_p5 = scmp.ne.s32.totalorder %s1468_s15, %s1098_s19  ;;  %p1542_p10 = scmp.ne.s32.totalorder %s1530_s7, 0 }
 0x119   : > { %v544_v12 = vsel %vm543_vm1, %v468_v11, 0.0  ;;  %v720_v13 = vld [vmem:[%s1514_s3] ss:$0 sm:$0xff]  ;;  %s1198_s26 = smov [#allocation9]  }
 0x11a   : > { %545 = vadd.xlane.f32.xlu0 %v544_v12  ;;  %p1100_p11 = pnand %p1099_p5, %p1542_p10  ;;  %s1102_s22 = sshll.u32 %s1198_s26, 4  ;;  %s1103_s22 = int_to_ptr.vmem [resolvable:$false] %s1102_s22 }
 0x11b   : > { %769 = vmatpush3.bf16.msra.mxu0 %v855_v2  ;;  %s1104_s29 = scalar_lea.vmem %s1103_s22, 32  ;;  %p1105_p1 = scmp.lt.s32.totalorder %s1468_s15, %s1103_s22 }
 0x11c   : > { %770 = vmatprep.subr.bf16.mxu0 %v1196_v0  ;;  %p1101_p0 = pneg %p1100_p11  ;;  %p1106_p3 = scmp.lt.s32.totalorder %s1104_s29, %s1098_s19 }
 0x11e   : > { %p1107_p7 = por %p1106_p3, %p1105_p1 }
 0x11f   : > { %771 = vmatpush3.bf16.msra.mxu0 %v856_v3 }
 0x120   : > { %772 = vmatprep.subr.bf16.mxu0 %v1196_v0  ;;  %p1108_p8 = pnand %p1107_p7, %p1101_p0 }
 0x123   : > { %773 = vmatpush3.bf16.msra.mxu0 %v857_v4 }
 0x124   : > { %774 = vmatprep.subr.bf16.mxu0 %v1196_v0 }
 0x127   : > { %775 = vmatpush3.bf16.msra.mxu0 %v858_v5 }
 0x128   : > { %776 = vmatprep.subr.bf16.mxu0 %v1196_v0 }
 0x12b   : > { %777 = vmatpush3.bf16.msra.mxu0 %v859_v6 }
 0x12c   : > { %778 = vmatprep.subr.bf16.mxu0 %v1196_v0 }
 0x12f   : > { %779 = vmatpush3.bf16.msra.mxu0 %v860_v7 }
 0x130   : > { %780 = vmatprep.subr.bf16.mxu0 %v1196_v0 }
 0x133   : > { %781 = vmatpush3.bf16.msra.mxu0 %v861_v8 }
 0x136   : > { %783 = vmatmul.mubr.bf16.vlgmr.msra.gmra.mrb[0].mxu0 %v355_v10 }
 0x1a7   : > { %v546_v20 = vpop.xlane.xlu0 %545 }
 0x1a8   : > { %v547_v21 = vmax.f32 %v546_v20, 1e-09 }
 0x209   : > { %v461_v14 = vpop.f32.mrb[0].mxu0 }
 0x20a   : > { %v462_v15 = vadd.f32 %v720_v13, %v461_v14  ;;  %v784_v16 = vpop.f32.mrb[1].mxu0 }
 0x20b   : > { %v464_v17 = vpop.f32.mrb[2].mxu0 }
 0x20c   : > { %862 = vtanh.f32 %v462_v15  ;;  %v785_v18 = vpop.f32.mrb[3].mxu0 }
 0x20d   : > { %864 = vrcp.f32 %v547_v21 }
 0x216   : > { %v863_v19 = vpop.eup %862 }
 0x217   : > { %787 = vmatpush3.msra.mxu1 %v863_v19  ;;  %v865_v22 = vpop.eup %864 }
 0x218   : > { %789 = vmatmul.mubr.msk.f32.vlgmr.msra.gmra.mrb[0].mxu1 %vm469_vm2, %v468_v11 }
 0x2eb   : > { %v539_v23 = vpop.f32.mrb[0].mxu1 }
 0x2ec   : > { %v549_v24 = vmul.f32 %v865_v22, %v539_v23  ;;  %v790_v25 = vpop.f32.mrb[1].mxu1 }
 0x2ee   : > { %550 = vst [vmem:[%s1451_s14] sm:$0x1] %v549_v24 }
 0x2ef   : > { %1111 = shalt.err (!%p1108_p8)
}
 0x2f0   : > { %s1112_s8 = scalar_lea.hbm %s1466_s6, 16  ;;  %s1116_s28 = scalar_lea.hbm %s1516_s5, 32 }
 0x2f1   : > { %p1113_p9 = scmp.ne.s32.totalorder %s1466_s6, %s1112_s8  ;;  %p1117_p2 = scmp.lt.u32.totalorder %s1466_s6, %s1516_s5 }
 0x2f2   : > { %p1118_p4 = scmp.lt.u32.totalorder %s1116_s28, %s1112_s8  ;;  %p1120_p5 = scmp.lt.u32.totalorder %s1112_s8, %s1466_s6 }
 0x2f3   : > { %p1114_p12 = pnand %p1113_p9, %p1542_p10 }
 0x2f4   : > { %p1119_p6 = por %p1118_p4, %p1117_p2 }
 0x2f5   : > { %p1115_p13 = pneg %p1114_p12 }
 0x2f6   : > { %p1121_p11 = por %p1120_p5, %p1119_p6 }
 0x2f8   : > { %p1122_p0 = pnand %p1121_p11, %p1115_p13 }
 0x2fa   : > { %1125 = shalt.err (!%p1122_p0)
}
 0x2fb   : > { %795 = dma.vmem_to_hbm [thread:$0]  (%p1542_p10), %s1468_s15, 16, %s1466_s6, %s552_s13  }
 0x2fc PF: > { %s1543_s2 = sld [smem:[#allocation39_spill]]  ;;  %s1544_s14 = sld [smem:[#allocation43_spill]] }
 0x2fd   : > { %p807_p1 = scmp.ge.s32.totalorder %s1182_s25, 2 }
 0x302   : > { %s576_s16 = sand.u32 1, %s1543_s2   ;;  %p1545_p3 = scmp.ne.s32.totalorder %s1544_s14, 0 }
 0x303   : > { %s577_s9 = scalar_lea.sflag [#allocation8], %s576_s16 }
 0x304   : > { %p802_p7 = pnand %p807_p1, %p1545_p3 }
 0x306   : > { %1165 = dma.done.wait (!%p802_p7), %s577_s9, 16  }
 0x307   : > { %1167 = vsyncadd (!%p802_p7), %s577_s9, 4294967280  ;;  %s1546_s25 = sld [smem:[#allocation41_spill]]  ;;  %s1547_s18 = sld [smem:[#allocation40_spill]] }
 0x308   : > { %s1548_s0 = sld [smem:[#allocation42_spill]]  ;;  %s1549_s23 = smov %s1174_s24 }
 0x30d   : > { %p22_p8 = scmp.ge.s32.totalorder %s1546_s25, 4   ;;  %s1550_s24 = smov %s1547_s18 }
 0x30f   :  { %24 = sbr.rel (!%p22_p8) target bundleno = 19 (0x13), region = 133 }
 0x316   :  { %581 = vsyncpa [#allocation7], 1 }
 0x317   :  { %583 = vsyncpa [#allocation7 + $0x1], 1 }
 0x318   :  { %584 = vsyncpa [#allocation8], 1 }
 0x319   :  { %586 = vsyncpa [#allocation8 + $0x1], 1 }
 0x31a   :  { %587 = vsyncmov [#allocation3] }
 0x31d   :  { %s588_s7 = vpop.sfrf %587 }
 0x31e   :  { %p733_p10 = scmp.ne.s32.totalorder %s588_s7, 0 }
 0x320   :  { %592 = shalt.err (%p733_p10)  }
 0x321   :  { %594 = vsyncmov [#allocation3 + $0x1] }
 0x324   :  { %s595_s11 = vpop.sfrf %594 }
 0x325   :  { %p734_p9 = scmp.ne.s32.totalorder %s595_s11, 0 }
 0x327   :  { %599 = shalt.err (%p734_p9)  }
 0x328   :  { %601 = vsyncmov [#allocation3 + $0x2] }
 0x32b   :  { %s602_s10 = vpop.sfrf %601 }
 0x32c   :  { %p735_p12 = scmp.ne.s32.totalorder %s602_s10, 0 }
 0x32e   :  { %606 = shalt.err (%p735_p12)  }
 0x32f   :  { %608 = vsyncmov [#allocation3 + $0x3] }
 0x332   :  { %s609_s12 = vpop.sfrf %608 }
 0x333   :  { %p736_p13 = scmp.ne.s32.totalorder %s609_s12, 0 }
 0x335   :  { %613 = shalt.err (%p736_p13)  }
 0x336   :  { %615 = vsyncmov [#allocation3 + $0x4] }
 0x339   :  { %s616_s1 = vpop.sfrf %615 }
 0x33a   :  { %p737_p2 = scmp.ne.s32.totalorder %s616_s1, 0 }
 0x33c   :  { %620 = shalt.err (%p737_p2)  }
 0x33d   :  { %622 = vsyncmov [#allocation3 + $0x5] }
 0x340   :  { %s623_s3 = vpop.sfrf %622 }
 0x341   :  { %p738_p4 = scmp.ne.s32.totalorder %s623_s3, 0 }
 0x343   :  { %627 = shalt.err (%p738_p4)  }
 0x344   :  { %629 = vsyncmov [#allocation3 + $0x6] }
 0x347   :  { %s630_s4 = vpop.sfrf %629 }
 0x348   :  { %p739_p6 = scmp.ne.s32.totalorder %s630_s4, 0 }
 0x34a   :  { %634 = shalt.err (%p739_p6)  }
 0x34b   :  { %636 = vsyncmov [#allocation3 + $0x7] }
 0x34e   :  { %s637_s5 = vpop.sfrf %636 }
 0x34f   :  { %p740_p5 = scmp.ne.s32.totalorder %s637_s5, 0 }
 0x351   :  { %641 = shalt.err (%p740_p5)  }

</bundles_post_ra>
